<compile_context>
chip_gen: v5e
topology: v5e:2x2
jax: 0.10.0
libtpu: 0.0.40
codegen_flags: <defaults>
</compile_context>

<pallas_src>
import functools

import jax
import jax.numpy as jnp
from jax.experimental import pallas as pl
from jax.experimental.pallas import tpu as pltpu


def _round_up(x, m):
    return ((x + m - 1) // m) * m


def _mlp_kernel(x_ref, w1_ref, b1_ref, w2_ref, b2_ref, w3_ref, b3_ref, o_ref):
    """Fused 3-layer MLP on one (tb, in_dim) batch tile.

    relu(x @ W1 + b1) @ W2 + b2 -> relu -> @ W3 + b3.  All matmuls accumulate
    in f32 on the MXU; biases stay f32; inputs/weights may be bf16.
    """
    x = x_ref[...]

    # Layer 1: Linear(input_dim, 128) + ReLU
    h1 = jnp.dot(x, w1_ref[...], preferred_element_type=jnp.float32)
    h1 = jnp.maximum(h1 + b1_ref[...], 0.0)
    # Dropout(0.3): identity in inference mode.

    # Layer 2: Linear(128, 64 -> 128 padded) + ReLU  (padded columns stay 0)
    h2 = jnp.dot(h1.astype(w2_ref.dtype), w2_ref[...],
                 preferred_element_type=jnp.float32)
    h2 = jnp.maximum(h2 + b2_ref[...], 0.0)
    # Dropout(0.3): identity in inference mode.

    # Layer 3: Linear(64 -> 128 padded, out_dim)  (padded rows are zero)
    out = jnp.dot(h2.astype(w3_ref.dtype), w3_ref[...],
                  preferred_element_type=jnp.float32)
    o_ref[...] = (out + b3_ref[...]).astype(o_ref.dtype)


@functools.partial(jax.jit,
                   static_argnames=("block_b", "compute_dtype", "out_dtype"))
def social_policy_predictor(x, w1, b1, w2, b2, w3, b3, *,
                            block_b=4096, compute_dtype=jnp.float32,
                            out_dtype=jnp.float32):
    """Batch-tiled fused MLP forward.

    Shapes:
      x  : (B, input_dim)
      w1 : (input_dim, 128),  b1 : (1, 128)
      w2 : (128, 64),         b2 : (1, 64)
      w3 : (64, output_dim),  b3 : (1, output_dim)
    Returns (B, output_dim) in `out_dtype` (default float32).
    """
    B, in_dim = x.shape
    h1_dim = w1.shape[1]
    h2_dim = w2.shape[1]
    out_dim = w3.shape[1]

    LANES = 128
    h2_pad = _round_up(h2_dim, LANES)      # 64 -> 128: lane-dense hidden matmul

    # Batch tile: multiple of 8 sublanes, at most block_b rows.  No batch pad
    # of x — Pallas masks the ragged last tile's out-of-bounds rows.
    b8 = _round_up(B, 8)
    tb = min(block_b, b8)
    # Keep >=2 grid steps for big single-tile batches so both v7x TensorCores
    # get work on the "parallel" batch axis (no-op for small batches).
    if tb == b8 and tb >= 4096:
        tb = _round_up((b8 + 1) // 2, 8)
    grid = (pl.cdiv(B, tb),)

    cdt = compute_dtype
    f32 = jnp.float32

    # One-time tiny weight pads/casts (zeros are numerically exact).  x is NOT
    # padded or copied; it is only cast if a non-f32 compute dtype is asked for.
    xc = x if x.dtype == cdt else x.astype(cdt)
    w1c = w1.astype(cdt)
    b1c = b1.reshape(1, h1_dim).astype(f32)
    w2p = jnp.pad(w2, ((0, 0), (0, h2_pad - h2_dim))).astype(cdt)
    b2p = jnp.pad(b2.reshape(1, h2_dim),
                  ((0, 0), (0, h2_pad - h2_dim))).astype(f32)
    w3p = jnp.pad(w3, ((0, h2_pad - h2_dim), (0, 0))).astype(cdt)
    b3c = b3.reshape(1, out_dim).astype(f32)

    # Weights/biases: same block every grid step -> fetched once, VMEM-resident.
    const = lambda a: pl.BlockSpec(a.shape, lambda i: (0, 0))

    itemsize = jnp.dtype(cdt).itemsize
    out_itemsize = jnp.dtype(out_dtype).itemsize
    flops = 2 * B * (in_dim * h1_dim + h1_dim * h2_dim + h2_dim * out_dim)
    bytes_accessed = int(
        B * in_dim * itemsize
        + (w1c.size + w2p.size + w3p.size) * itemsize
        + (b1c.size + b2p.size + b3c.size) * 4
        + B * out_dim * out_itemsize)

    out = pl.pallas_call(
        _mlp_kernel,
        out_shape=jax.ShapeDtypeStruct((B, out_dim), out_dtype),
        grid=grid,
        in_specs=[
            pl.BlockSpec((tb, in_dim), lambda i: (i, 0)),   # batch-tiled x
            const(w1c), const(b1c),
            const(w2p), const(b2p),
            const(w3p), const(b3c),
        ],
        out_specs=pl.BlockSpec((tb, out_dim), lambda i: (i, 0)),
        compiler_params=pltpu.CompilerParams(
            dimension_semantics=("parallel",)),
        cost_estimate=pl.CostEstimate(
            flops=flops, transcendentals=0, bytes_accessed=bytes_accessed),
    )(xc, w1c, b1c, w2p, b2p, w3p, b3c)

    return out


def _init_params(key, input_dim, output_dim):
    """Deterministic parameter init (Kaiming-uniform-ish, like nn.Linear)."""
    ks = jax.random.split(key, 6)

    def linear(kw, kb, fan_in, fan_out):
        bound = 1.0 / jnp.sqrt(fan_in)
        w = jax.random.uniform(kw, (fan_in, fan_out), jnp.float32, -bound, bound)
        b = jax.random.uniform(kb, (1, fan_out), jnp.float32, -bound, bound)
        return w, b

    w1, b1 = linear(ks[0], ks[1], input_dim, 128)
    w2, b2 = linear(ks[2], ks[3], 128, 64)
    w3, b3 = linear(ks[4], ks[5], 64, output_dim)
    return w1, b1, w2, b2, w3, b3


def _reference(x, w1, b1, w2, b2, w3, b3):
    h1 = jnp.maximum(x @ w1 + b1, 0.0)
    h2 = jnp.maximum(h1 @ w2 + b2, 0.0)
    return h2 @ w3 + b3


if __name__ == "__main__":
    key = jax.random.PRNGKey(0)
    k_x, k_x2, k_x3, k_p = jax.random.split(key, 4)

    input_dim, output_dim = 32, 8
    params = _init_params(k_p, input_dim, output_dim)

    # Small batch, single grid step.
    batch = 8
    x = jax.random.normal(k_x, (batch, input_dim), dtype=jnp.float32)
    out = jax.block_until_ready(social_policy_predictor(x, *params))
    ref = _reference(x, *params)
    assert out.shape == (batch, output_dim)
    assert jnp.allclose(out, ref, atol=1e-5, rtol=1e-5), "mismatch (B=8)"

    # Tiny batch smaller than one sublane tile (masked last-tile writes).
    batch2 = 2
    x2 = jax.random.normal(k_x2, (batch2, input_dim), dtype=jnp.float32)
    out2 = jax.block_until_ready(social_policy_predictor(x2, *params))
    ref2 = _reference(x2, *params)
    assert out2.shape == (batch2, output_dim)
    assert jnp.allclose(out2, ref2, atol=1e-5, rtol=1e-5), "mismatch (B=2)"

    # Multi-step grid with a ragged last batch tile (grid of 3, no batch pad).
    batch3 = 300
    x3 = jax.random.normal(k_x3, (batch3, input_dim), dtype=jnp.float32)
    out3 = jax.block_until_ready(
        social_policy_predictor(x3, *params, block_b=128))
    ref3 = _reference(x3, *params)
    assert out3.shape == (batch3, output_dim)
    assert jnp.allclose(out3, ref3, atol=1e-5, rtol=1e-5), "mismatch (B=300)"

    print("KERNEL_OK")
</pallas_src>

<mosaic_0001>
module attributes {stable_mosaic.version = 11 : i64} {
  func.func @_mlp_kernel(%arg0: i32, %arg1: memref<8x32xf32, #tpu.memory_space<vmem>>, %arg2: memref<32x128xf32, #tpu.memory_space<vmem>>, %arg3: memref<1x128xf32, #tpu.memory_space<vmem>>, %arg4: memref<128x128xf32, #tpu.memory_space<vmem>>, %arg5: memref<1x128xf32, #tpu.memory_space<vmem>>, %arg6: memref<128x8xf32, #tpu.memory_space<vmem>>, %arg7: memref<1x8xf32, #tpu.memory_space<vmem>>, %arg8: memref<8x8xf32, #tpu.memory_space<vmem>>) attributes {dimension_semantics = [#tpu.dimension_semantics<parallel>], iteration_bounds = array<i64: 1>, scalar_prefetch = 0 : i64, scratch_operands = 0 : i64, tpu.core_type = #tpu.core_type<tc>, window_params = [{transform_indices = @transform_0, window_bounds = array<i64: 8, 32>}, {pipeline_mode = #tpu.pipeline_mode<synchronous>, transform_indices = @transform_1, window_bounds = array<i64: 32, 128>}, {pipeline_mode = #tpu.pipeline_mode<synchronous>, transform_indices = @transform_2, window_bounds = array<i64: 1, 128>}, {pipeline_mode = #tpu.pipeline_mode<synchronous>, transform_indices = @transform_3, window_bounds = array<i64: 128, 128>}, {pipeline_mode = #tpu.pipeline_mode<synchronous>, transform_indices = @transform_4, window_bounds = array<i64: 1, 128>}, {pipeline_mode = #tpu.pipeline_mode<synchronous>, transform_indices = @transform_5, window_bounds = array<i64: 128, 8>}, {pipeline_mode = #tpu.pipeline_mode<synchronous>, transform_indices = @transform_6, window_bounds = array<i64: 1, 8>}, {transform_indices = @transform_7, window_bounds = array<i64: 8, 8>}]} {
    %c0 = arith.constant 0 : index
    %c0_0 = arith.constant 0 : index
    %0 = vector.load %arg1[%c0, %c0_0] : memref<8x32xf32, #tpu.memory_space<vmem>>, vector<8x32xf32>
    %c0_1 = arith.constant 0 : index
    %c0_2 = arith.constant 0 : index
    %1 = vector.load %arg2[%c0_1, %c0_2] : memref<32x128xf32, #tpu.memory_space<vmem>>, vector<32x128xf32>
    %cst = arith.constant dense<0.000000e+00> : vector<8x128xf32>
    %2 = tpu.matmul %0, %1, %cst {dimension_numbers = #tpu.dot_dimension_numbers<[1], [0], [0], [1], [0, 0, 1, 1], [], []>} : vector<8x32xf32>, vector<32x128xf32>, vector<8x128xf32> -> vector<8x128xf32>
    %c0_3 = arith.constant 0 : index
    %c0_4 = arith.constant 0 : index
    %3 = vector.load %arg3[%c0_3, %c0_4] : memref<1x128xf32, #tpu.memory_space<vmem>>, vector<1x128xf32>
    %4 = vector.broadcast %3 : vector<1x128xf32> to vector<8x128xf32>
    %5 = arith.addf %2, %4 : vector<8x128xf32>
    %cst_5 = arith.constant 0.000000e+00 : f32
    %6 = vector.broadcast %cst_5 : f32 to vector<8x128xf32>
    %7 = arith.maximumf %5, %6 : vector<8x128xf32>
    %c0_6 = arith.constant 0 : index
    %c0_7 = arith.constant 0 : index
    %8 = vector.load %arg4[%c0_6, %c0_7] : memref<128x128xf32, #tpu.memory_space<vmem>>, vector<128x128xf32>
    %cst_8 = arith.constant dense<0.000000e+00> : vector<8x128xf32>
    %9 = tpu.matmul %7, %8, %cst_8 {dimension_numbers = #tpu.dot_dimension_numbers<[1], [0], [0], [1], [0, 0, 1, 1], [], []>} : vector<8x128xf32>, vector<128x128xf32>, vector<8x128xf32> -> vector<8x128xf32>
    %c0_9 = arith.constant 0 : index
    %c0_10 = arith.constant 0 : index
    %10 = vector.load %arg5[%c0_9, %c0_10] : memref<1x128xf32, #tpu.memory_space<vmem>>, vector<1x128xf32>
    %11 = vector.broadcast %10 : vector<1x128xf32> to vector<8x128xf32>
    %12 = arith.addf %9, %11 : vector<8x128xf32>
    %cst_11 = arith.constant 0.000000e+00 : f32
    %13 = vector.broadcast %cst_11 : f32 to vector<8x128xf32>
    %14 = arith.maximumf %12, %13 : vector<8x128xf32>
    %c0_12 = arith.constant 0 : index
    %c0_13 = arith.constant 0 : index
    %15 = vector.load %arg6[%c0_12, %c0_13] : memref<128x8xf32, #tpu.memory_space<vmem>>, vector<128x8xf32>
    %cst_14 = arith.constant dense<0.000000e+00> : vector<8x8xf32>
    %16 = tpu.matmul %14, %15, %cst_14 {dimension_numbers = #tpu.dot_dimension_numbers<[1], [0], [0], [1], [0, 0, 1, 1], [], []>} : vector<8x128xf32>, vector<128x8xf32>, vector<8x8xf32> -> vector<8x8xf32>
    %c0_15 = arith.constant 0 : index
    %c0_16 = arith.constant 0 : index
    %17 = vector.load %arg7[%c0_15, %c0_16] : memref<1x8xf32, #tpu.memory_space<vmem>>, vector<1x8xf32>
    %18 = vector.broadcast %17 : vector<1x8xf32> to vector<8x8xf32>
    %19 = arith.addf %16, %18 : vector<8x8xf32>
    %c0_17 = arith.constant 0 : index
    %c0_18 = arith.constant 0 : index
    %20 = vector.load %arg8[%c0_17, %c0_18] : memref<8x8xf32, #tpu.memory_space<vmem>>, vector<8x8xf32>
    tpu.vector_store %arg8[%c0_17, %c0_18], %19 {strides = array<i32>} : memref<8x8xf32, #tpu.memory_space<vmem>>, vector<8x8xf32>,
    return
  }
  func.func @transform_0(%arg0: i32) -> (i32, i32) {
    %c0_i32 = arith.constant 0 : i32
    %c0_i32_0 = arith.constant 0 : i32
    return %arg0, %c0_i32 : i32, i32
  }
  func.func @transform_1(%arg0: i32) -> (i32, i32) {
    %c0_i32 = arith.constant 0 : i32
    %c0_i32_0 = arith.constant 0 : i32
    %c0_i32_1 = arith.constant 0 : i32
    return %c0_i32, %c0_i32_0 : i32, i32
  }
  func.func @transform_2(%arg0: i32) -> (i32, i32) {
    %c0_i32 = arith.constant 0 : i32
    %c0_i32_0 = arith.constant 0 : i32
    %c0_i32_1 = arith.constant 0 : i32
    return %c0_i32, %c0_i32_0 : i32, i32
  }
  func.func @transform_3(%arg0: i32) -> (i32, i32) {
    %c0_i32 = arith.constant 0 : i32
    %c0_i32_0 = arith.constant 0 : i32
    %c0_i32_1 = arith.constant 0 : i32
    return %c0_i32, %c0_i32_0 : i32, i32
  }
  func.func @transform_4(%arg0: i32) -> (i32, i32) {
    %c0_i32 = arith.constant 0 : i32
    %c0_i32_0 = arith.constant 0 : i32
    %c0_i32_1 = arith.constant 0 : i32
    return %c0_i32, %c0_i32_0 : i32, i32
  }
  func.func @transform_5(%arg0: i32) -> (i32, i32) {
    %c0_i32 = arith.constant 0 : i32
    %c0_i32_0 = arith.constant 0 : i32
    %c0_i32_1 = arith.constant 0 : i32
    return %c0_i32, %c0_i32_0 : i32, i32
  }
  func.func @transform_6(%arg0: i32) -> (i32, i32) {
    %c0_i32 = arith.constant 0 : i32
    %c0_i32_0 = arith.constant 0 : i32
    %c0_i32_1 = arith.constant 0 : i32
    return %c0_i32, %c0_i32_0 : i32, i32
  }
  func.func @transform_7(%arg0: i32) -> (i32, i32) {
    %c0_i32 = arith.constant 0 : i32
    %c0_i32_0 = arith.constant 0 : i32
    return %arg0, %c0_i32 : i32, i32
  }
}

</mosaic_0001>

<bundles_post_ra>
// kernel: social_policy_predictor.1
= control target key start
LH: loop header
LB: loop body
LE: loop exit
PB: predicated region body
PF: predicated region fallthrough
CT: control target
= control target key end

     0   :  { %vm36_vm0 = vcmask 261120   ;;  %s355_s0 = inlined_call_operand.vmem [shape: f32[8,32], index: 0, kind: input, shape index: {}]   ;;  %s356_s1 = inlined_call_operand.vmem [shape: f32[32,128], index: 1, kind: input, shape index: {}]   ;;  %s357_s2 = inlined_call_operand.vmem [shape: f32[1,128], index: 2, kind: input, shape index: {}]   ;;  %s358_s3 = inlined_call_operand.vmem [shape: f32[128,128], index: 3, kind: input, shape index: {}]   ;;  %s359_s4 = inlined_call_operand.vmem [shape: f32[1,128], index: 4, kind: input, shape index: {}]   ;;  %s360_s5 = inlined_call_operand.vmem [shape: f32[128,8], index: 5, kind: input, shape index: {}]   ;;  %s361_s6 = inlined_call_operand.vmem [shape: f32[1,8], index: 6, kind: input, shape index: {}]   ;;  %s362_s7 = inlined_call_operand.hbm [shape: f32[8,8], index: 7, kind: output, shape index: {}]  }
   0x1   :  { %v31_v0 = vld [vmem:[%s356_s1 + $0x18] sm:$0xff]  ;;  %v30_v1 = vld [vmem:[%s356_s1 + $0x10] sm:$0xff]  ;;  %v29_v3 = vld [vmem:[%s356_s1 + $0x8] sm:$0xff] }
   0x2   :  { %52 = vmatpush.msra.mxu0 %v31_v0  ;;  %v76_v2 = vld [vmem:[%s358_s3 + $0x78] sm:$0xff]  ;;  %v75_v4 = vld [vmem:[%s358_s3 + $0x70] sm:$0xff]  ;;  %v74_v5 = vld [vmem:[%s358_s3 + $0x68] sm:$0xff] }
   0x3   :  { %81 = vmatpush.msra.mxu1 %v76_v2  ;;  %v28_v6 = vld [vmem:[%s356_s1] sm:$0xff]  ;;  %v72_v9 = vld [vmem:[%s358_s3 + $0x58] sm:$0xff] }
   0x4   :  { %53 = vmatpush.msra.mxu0 %v30_v1  ;;  %v27_v7 = vld [vmem:[%s355_s0] sm:$0xff] }
   0x5   :  { %82 = vmatpush.msra.mxu1 %v75_v4  ;;  %v73_v8 = vld [vmem:[%s358_s3 + $0x60] sm:$0xff] }
   0x6   :  { %54 = vmatpush.msra.mxu0 %v29_v3 }
   0x7   :  { %83 = vmatpush.msra.mxu1 %v74_v5 }
   0x8   :  { %55 = vmatpush.msra.mxu0 %v28_v6 }
   0x9   :  { %12 = vsyncpa [#allocation3], 0  ;;  %160 = vmatmul.msk.f32.vlgmr.msra.gmra.mxu0 %vm36_vm0, %v27_v7  ;;  %84 = vmatpush.msra.mxu1 %v73_v8  ;;  %v71_v10 = vld [vmem:[%s358_s3 + $0x50] sm:$0xff]  ;;  %v70_v11 = vld [vmem:[%s358_s3 + $0x48] sm:$0xff]  ;;  %s191_s26 = smov [#allocation2]   ;;  %s151_s30 = sshll.u32 %s362_s7, 4  ;;  %s152_s30 = int_to_ptr.hbm [resolvable:$true] %s151_s30 }
   0xa   :  { %v69_v12 = vld [vmem:[%s358_s3 + $0x40] sm:$0xff]  ;;  %v68_v13 = vld [vmem:[%s358_s3 + $0x38] sm:$0xff]  ;;  %v67_v14 = vld [vmem:[%s358_s3 + $0x30] sm:$0xff]  ;;  %s149_s27 = sshll.u32 %s191_s26, 4  ;;  %vm142_vm1 = vcmask 64512   ;;  %s150_s27 = int_to_ptr.vmem [resolvable:$true] %s149_s27 }
   0xb   :  { %85 = vmatpush.msra.mxu1 %v72_v9  ;;  %v66_v15 = vld [vmem:[%s358_s3 + $0x28] sm:$0xff]  ;;  %v65_v16 = vld [vmem:[%s358_s3 + $0x20] sm:$0xff]  ;;  %v64_v17 = vld [vmem:[%s358_s3 + $0x18] sm:$0xff] }
   0xc   :  { %v63_v18 = vld [vmem:[%s358_s3 + $0x10] sm:$0xff]  ;;  %v62_v19 = vld [vmem:[%s358_s3 + $0x8] sm:$0xff]  ;;  %v61_v20 = vld [vmem:[%s358_s3] sm:$0xff] }
   0xd   :  { %86 = vmatpush.msra.mxu1 %v71_v10  ;;  %v117_v21 = vld [vmem:[%s360_s5 + $0x78] sm:$0xff]  ;;  %v116_v22 = vld [vmem:[%s360_s5 + $0x70] sm:$0xff]  ;;  %v115_v23 = vld [vmem:[%s360_s5 + $0x68] sm:$0xff] }
   0xe   :  { %122 = vmatpush.msra.mxu2 %v117_v21  ;;  %v114_v24 = vld [vmem:[%s360_s5 + $0x60] sm:$0xff]  ;;  %v113_v25 = vld [vmem:[%s360_s5 + $0x58] sm:$0xff]  ;;  %v112_v26 = vld [vmem:[%s360_s5 + $0x50] sm:$0xff] }
   0xf   :  { %87 = vmatpush.msra.mxu1 %v70_v11  ;;  %v111_v27 = vld [vmem:[%s360_s5 + $0x48] sm:$0xff]  ;;  %v110_v28 = vld [vmem:[%s360_s5 + $0x40] sm:$0xff]  ;;  %v109_v29 = vld [vmem:[%s360_s5 + $0x38] sm:$0xff] }
  0x10   :  { %123 = vmatpush.msra.mxu2 %v116_v22  ;;  %v108_v30 = vld [vmem:[%s360_s5 + $0x30] sm:$0xff]  ;;  %v107_v31 = vld [vmem:[%s360_s5 + $0x28] sm:$0xff]  ;;  %v106_v32 = vld [vmem:[%s360_s5 + $0x20] sm:$0xff] }
  0x11   :  { %88 = vmatpush.msra.mxu1 %v69_v12  ;;  %v105_v33 = vld [vmem:[%s360_s5 + $0x18] sm:$0xff]  ;;  %v162_v34 = vld [vmem:[%s357_s2] ss:$0 sm:$0xff]  ;;  %v104_v38 = vld [vmem:[%s360_s5 + $0x10] sm:$0xff] }
  0x12   :  { %124 = vmatpush.msra.mxu2 %v115_v23  ;;  %v103_v39 = vld [vmem:[%s360_s5 + $0x8] sm:$0xff]  ;;  %v102_v40 = vld [vmem:[%s360_s5] sm:$0xff] }
  0x13   :  { %89 = vmatpush.msra.mxu1 %v68_v13  ;;  %v163_v41 = vld [vmem:[%s359_s4] ss:$0 sm:$0xff] }
  0x14   :  { %125 = vmatpush.msra.mxu2 %v114_v24  ;;  %v164_v45 = vld [vmem:[%s361_s6] ss:$0 sm:$0xff] }
  0x15   :  { %90 = vmatpush.msra.mxu1 %v67_v14 }
  0x16   :  { %126 = vmatpush.msra.mxu2 %v113_v25 }
  0x17   :  { %91 = vmatpush.msra.mxu1 %v66_v15 }
  0x18   :  { %127 = vmatpush.msra.mxu2 %v112_v26 }
  0x19   :  { %92 = vmatpush.msra.mxu1 %v65_v16 }
  0x1a   :  { %128 = vmatpush.msra.mxu2 %v111_v27 }
  0x1b   :  { %93 = vmatpush.msra.mxu1 %v64_v17 }
  0x1c   :  { %129 = vmatpush.msra.mxu2 %v110_v28 }
  0x1d   :  { %94 = vmatpush.msra.mxu1 %v63_v18 }
  0x1e   :  { %130 = vmatpush.msra.mxu2 %v109_v29 }
  0x1f   :  { %95 = vmatpush.msra.mxu1 %v62_v19 }
  0x20   :  { %131 = vmatpush.msra.mxu2 %v108_v30 }
  0x21   :  { %96 = vmatpush.msra.mxu1 %v61_v20 }
  0x22   :  { %132 = vmatpush.msra.mxu2 %v107_v31 }
  0x24   :  { %133 = vmatpush.msra.mxu2 %v106_v32 }
  0x26   :  { %134 = vmatpush.msra.mxu2 %v105_v33 }
  0x28   :  { %135 = vmatpush.msra.mxu2 %v104_v38 }
  0x2a   :  { %136 = vmatpush.msra.mxu2 %v103_v39 }
  0x2c   :  { %137 = vmatpush.msra.mxu2 %v102_v40 }
  0x86   :  { %v57_v35 = vpop.f32.mrf.mxu0 }
  0x87   :  { %v58_v36 = vadd.f32 %v162_v34, %v57_v35 }
  0x89   :  { %v60_v37 = vmax.f32 %v58_v36, 0.0 }
  0x8b   :  { %97 = vmatmul.f32.vlgmr.msra.gmra.mxu1 %v60_v37 }
 0x108   :  { %v98_v42 = vpop.f32.mrf.mxu1 }
 0x109   :  { %v99_v43 = vadd.f32 %v163_v41, %v98_v42 }
 0x10b   :  { %v101_v44 = vmax.f32 %v99_v43, 0.0 }
 0x10d   :  { %138 = vmatmul.f32.vlgmr.msra.gmra.mxu2 %v101_v44 }
 0x190   :  { %v139_v46 = vpop.f32.mrf.mxu2 }
 0x191   :  { %v140_v47 = vadd.f32 %v164_v45, %v139_v46 }
 0x193   :  { %143 = vst.msk [vmem:[#allocation2] sm:$0xff] %vm142_vm1, %v140_v47 }
 0x194   :  { %154 = dma.vmem_to_hbm [thread:$0]  %s150_s27, 128, %s152_s30, [#allocation3]  }
 0x195   :  { %189 = dma.done.wait [#allocation3], 128  }
 0x196   :  { %190 = vsyncadd [#allocation3], 4294967168 }
 0x197   :  { %159 = vsyncpa [#allocation3], 1 }

</bundles_post_ra>
